<compile_context>
chip_gen: v7x
topology: tpu7x:2x2x1
jax: 0.10.0
libtpu: 0.0.40
codegen_flags: <defaults>
</compile_context>

<pallas_src>
import numpy as np
import jax
import jax.numpy as jnp
from jax.experimental import pallas as pl
from jax.experimental.pallas import tpu as pltpu

EPS = 1e-6
HP = 128        # padded hidden / lane width (H=30 real lanes, rest zero)
FEAT_OFF = 16   # column of the packed step input where the real features start
# Packed step-input (B,128) column layout:
#   cols 0..9  : bernoulli uniforms tiled [u_enable, u_favor, u_enable, ...]
#   col  10    : game_finished (mask copy; it also appears among the features)
#   cols 16..  : the IN real features fed to combined_net (W1 rows match)


# -----------------------------------------------------------------------------
# Kernel: one RNN step per grid iteration, h/c carried in VMEM scratch
# -----------------------------------------------------------------------------
def _arbitrator_step_kernel(x_ref, state0_ref, w_ref, b_ref, out_ref, state_scr):
    f32 = jnp.float32
    bf16 = jnp.bfloat16
    t = pl.program_id(0)

    @pl.when(t == 0)
    def _():
        state_scr[...] = state0_ref[...]

    x = x_ref[0]                          # (B, 128) f32 packed step input
    B = x.shape[0]
    h0 = state_scr[:, 0:HP]               # (B, 128)
    c0 = state_scr[:, HP:2 * HP]          # (B, 128)

    # ---- combined_net: Linear(IN, H) + ReLU (W1 rows live at cols 16:16+IN) --
    ht = jnp.dot(x.astype(bf16), w_ref[0:HP, 0:HP],
                 preferred_element_type=f32) + b_ref[8:9, 0:HP]
    ht = jnp.maximum(ht, 0.0)              # padded lanes stay exactly 0

    # ---- LSTMCell: x- and h-paths fused into one (B,256)x(256,512) matmul ----
    hh = jnp.concatenate([ht.astype(bf16), h0.astype(bf16)], axis=1)   # aligned
    z = (jnp.dot(hh, w_ref[HP:3 * HP, :], preferred_element_type=f32)
         + b_ref[0:1, :])                                              # (B, 512)
    i_g = jax.nn.sigmoid(z[:, 0:HP])
    f_g = jax.nn.sigmoid(z[:, HP:2 * HP])
    g_g = jnp.tanh(z[:, 2 * HP:3 * HP])
    o_g = jax.nn.sigmoid(z[:, 3 * HP:4 * HP])
    c1 = f_g * c0 + i_g * g_g              # padded lanes: 0.5*0 + 0.5*0 = 0
    h1 = o_g * jnp.tanh(c1)

    # ---- RedistributionPolicy: head weights tiled over cols 0..9 so the whole
    #      branch math runs on full 128-lane vregs -----------------------------
    logits = (jnp.dot(h1.astype(bf16), w_ref[3 * HP:4 * HP, 0:HP],
                      preferred_element_type=f32) + b_ref[16:17, 0:HP])
    p = jnp.clip(jax.nn.sigmoid(logits), EPS, 1.0 - EPS)   # (B,128), clamp first (as torch)
    log_p = jnp.log(p)
    log_1mp = jnp.log(1.0 - p)

    d_bool = x < p                          # uniforms tiled at cols 0..9 -> draws
    d = d_bool.astype(f32)
    lp = jnp.where(d_bool, log_p, log_1mp)  # == log(p*d + (1-p)*(1-d))
    amax = (d_bool == (p > 0.5)).astype(f32)
    ent = -p * log_p - (1.0 - p) * log_1mp

    col = jax.lax.broadcasted_iota(jnp.int32, (B, HP), 1)
    fin = x[:, 10:11] > 0.5                 # game_finished copy
    en_draw = d_bool[:, 0:1]                # raw enable draw (col 0)
    is_enable_col = (col % 2) == 0
    keep = jnp.logical_and(fin, jnp.logical_or(is_enable_col, en_draw))
    keep = jnp.logical_and(keep, col < 10)  # zero padding columns

    # column layout: [en_lp, fv_lp, en_d, fv_d, en_p, fv_p, en_amax, fv_amax,
    #                 en_ent, fv_ent, 0, ..., 0]
    stats = jnp.where(col < 2, lp,
            jnp.where(col < 4, d,
            jnp.where(col < 6, p,
            jnp.where(col < 8, amax, ent))))
    stats = jnp.where(keep, stats, 0.0)

    # ---- carry state + one lane-dense slab, 3 unmasked 128-lane stores -------
    state_scr[:, 0:HP] = h1
    state_scr[:, HP:2 * HP] = c1
    out_ref[0, :, 0:HP] = h1
    out_ref[0, :, HP:2 * HP] = c1
    out_ref[0, :, 2 * HP:3 * HP] = stats


# -----------------------------------------------------------------------------
# Parameter packing (PyTorch-style init, laid out for the kernel)
# -----------------------------------------------------------------------------
def pack_params(w1, b1, wih, bih, whh, bhh, we, be, wv, bv, *, input_size, hidden):
    f32 = jnp.float32
    H = hidden
    wslab = jnp.zeros((4 * HP, 4 * HP), f32)
    # combined_net Linear: its input rows start at FEAT_OFF (uniform/gf rows = 0)
    wslab = wslab.at[FEAT_OFF:FEAT_OFF + input_size, 0:H].set(jnp.transpose(w1))
    # LSTM gates (PyTorch order i|f|g|o), each gate on its own 128-lane block;
    # rows 128:256 = ht path (weight_ih), rows 256:384 = h0 path (weight_hh)
    for g in range(4):
        wslab = wslab.at[HP:HP + H, g * HP:g * HP + H].set(
            jnp.transpose(wih[g * H:(g + 1) * H, :]))
        wslab = wslab.at[2 * HP:2 * HP + H, g * HP:g * HP + H].set(
            jnp.transpose(whh[g * H:(g + 1) * H, :]))
    # redistribution heads tiled over columns 0..9: even=enable, odd=favor
    for c in range(10):
        head_w = we if c % 2 == 0 else wv
        wslab = wslab.at[3 * HP:3 * HP + H, c:c + 1].set(jnp.transpose(head_w))

    bias = jnp.zeros((24, 4 * HP), f32)     # rows 0 / 8 / 16 (8-sublane aligned)
    for g in range(4):
        bias = bias.at[0, g * HP:g * HP + H].set(
            bih[g * H:(g + 1) * H] + bhh[g * H:(g + 1) * H])
    bias = bias.at[8, 0:H].set(b1)
    for c in range(10):
        head_b = be[0] if c % 2 == 0 else bv[0]
        bias = bias.at[16, c].set(head_b)

    # bf16 weights at the MXU boundary (f32 accumulation); biases stay f32.
    return {"wslab": wslab.astype(jnp.bfloat16), "bias": bias}


def init_params(key, input_size=17, hidden=30):
    ks = jax.random.split(key, 5)

    def lin(k, fan_in, fan_out):
        kw, kb = jax.random.split(k)
        bound = 1.0 / (fan_in ** 0.5)
        w = jax.random.uniform(kw, (fan_out, fan_in), jnp.float32, -bound, bound)
        b = jax.random.uniform(kb, (fan_out,), jnp.float32, -bound, bound)
        return w, b

    H = hidden
    w1, b1 = lin(ks[0], input_size, H)       # combined_net Linear
    wih, bih = lin(ks[1], H, 4 * H)          # LSTMCell weight_ih / bias_ih
    whh, bhh = lin(ks[2], H, 4 * H)          # LSTMCell weight_hh / bias_hh
    we, be = lin(ks[3], H, 1)                # enable_redist
    wv, bv = lin(ks[4], H, 1)                # favor_first_player
    return pack_params(w1, b1, wih, bih, whh, bhh, we, be, wv, bv,
                       input_size=input_size, hidden=H)


# -----------------------------------------------------------------------------
# Step-input packing + kernel driver
# -----------------------------------------------------------------------------
def pack_step_input(pool, utilities0, utilities1, proposal, message,
                    game_finished, timestep, u_enable, u_favor,
                    share_utilities=True):
    f32 = jnp.float32
    B = pool.shape[0]
    gf = game_finished.astype(f32).reshape(B, 1)
    prop_enc = proposal.astype(f32) * gf            # zero on mid-move rows
    msg_enc = message.astype(f32) * (1.0 - gf)      # zero on final-move rows
    ts = jnp.full((B, 1), timestep, dtype=f32)
    if share_utilities:
        feats = [pool, utilities0, utilities1, prop_enc, msg_enc, gf, ts]
    else:
        feats = [pool, prop_enc, msg_enc, gf, ts]
    feats = jnp.concatenate([f.astype(f32) for f in feats], axis=-1)
    n_in = feats.shape[1]
    u2 = jnp.concatenate([u_enable.astype(f32).reshape(B, 1),
                          u_favor.astype(f32).reshape(B, 1)], axis=1)
    u_tiled = jnp.tile(u2, (1, 5))                  # cols 0..9
    x = jnp.concatenate(
        [u_tiled, gf, jnp.zeros((B, FEAT_OFF - 11), f32),
         feats, jnp.zeros((B, HP - FEAT_OFF - n_in), f32)], axis=1)
    return x                                        # (B, 128)


def _run_arbitrator_kernel(x_seq, h0, c0, params):
    """x_seq: (T, B, 128) packed step inputs -> (T, B, 384) output slab."""
    f32 = jnp.float32
    T, B, _ = x_seq.shape
    H = h0.shape[1]
    state0 = jnp.zeros((B, 2 * HP), f32)
    state0 = state0.at[:, 0:H].set(h0.astype(f32))
    state0 = state0.at[:, HP:HP + H].set(c0.astype(f32))

    grid_spec = pltpu.PrefetchScalarGridSpec(
        num_scalar_prefetch=0,
        grid=(T,),
        in_specs=[
            pl.BlockSpec((1, B, HP), lambda t: (t, 0, 0)),        # per-step input
            pl.BlockSpec((B, 2 * HP), lambda t: (0, 0)),          # initial state
            pl.BlockSpec((4 * HP, 4 * HP), lambda t: (0, 0)),     # weights (resident)
            pl.BlockSpec((24, 4 * HP), lambda t: (0, 0)),         # biases  (resident)
        ],
        out_specs=pl.BlockSpec((1, B, 3 * HP), lambda t: (t, 0, 0)),
        scratch_shapes=[pltpu.VMEM((B, 2 * HP), f32)],            # carried h|c
    )
    slab = pl.pallas_call(
        _arbitrator_step_kernel,
        grid_spec=grid_spec,
        out_shape=jax.ShapeDtypeStruct((T, B, 3 * HP), f32),
        compiler_params=pltpu.CompilerParams(
            dimension_semantics=("arbitrary",)),
    )(x_seq.astype(f32), state0, params["wslab"], params["bias"])
    return slab


# -----------------------------------------------------------------------------
# Module-equivalent single-step forward (semantics of ArbitratorModel.forward)
# -----------------------------------------------------------------------------
def arbitrator_forward(params, pool, utilities0, utilities1, proposal, message,
                       game_finished, timestep, hidden_state, cell_state,
                       u_enable, u_favor, entropy_reg=0.05, share_utilities=True):
    # TODO(synk): deterministic=True branch raises NotImplementedError in torch;
    # it is not implemented here either.
    f32 = jnp.float32
    B = pool.shape[0]
    H = hidden_state.shape[1]
    gf = game_finished.astype(f32).reshape(B, 1)

    x = pack_step_input(pool, utilities0, utilities1, proposal, message,
                        game_finished, timestep, u_enable, u_favor,
                        share_utilities)
    slab = _run_arbitrator_kernel(x[None], hidden_state, cell_state, params)[0]

    base = 2 * HP
    h1 = slab[:, 0:H]
    c1 = slab[:, HP:HP + H]
    en_lp = slab[:, base + 0:base + 1]
    fv_lp = slab[:, base + 1:base + 2]
    en_d = slab[:, base + 2:base + 3]
    fv_d = slab[:, base + 3:base + 4]
    en_pc = slab[:, base + 4]
    fv_pc = slab[:, base + 5]
    en_amax = slab[:, base + 6]
    fv_amax = slab[:, base + 7]
    en_ent = slab[:, base + 8]
    fv_ent = slab[:, base + 9]

    enable_decision = en_d.astype(jnp.uint8)      # .data.byte()
    favor_decision = fv_d.astype(jnp.uint8)
    enable_entropy = jnp.sum(en_ent)
    favor_entropy = jnp.sum(fv_ent)
    entropy_loss = -(enable_entropy + favor_entropy) * entropy_reg

    forward_stats = {
        "enable_probs": jnp.sum(en_pc),
        "enable_decision": jnp.sum(en_d),
        "enable_entropy": enable_entropy,
        "favor_probs": jnp.sum(fv_pc),
        "favor_decision": jnp.sum(fv_d),
        "favor_entropy": favor_entropy,
        "enable_argmax_count": jnp.sum(en_amax),
        "favor_argmax_count": jnp.sum(fv_amax),
        "enable_draws": jnp.sum(gf),     # batch_size - len(mid_move_indices)
        "favor_draws": jnp.sum(en_d),    # enable_decision.sum()
    }
    nodes = [en_lp, fv_lp]
    return (nodes, enable_decision, favor_decision, entropy_loss,
            h1, c1, forward_stats)


def arbitrator_forward_sequence(params, x_seq, hidden_state, cell_state):
    """T RNN steps fused in ONE pallas_call (weights resident, state in VMEM)."""
    H = hidden_state.shape[1]
    slab = _run_arbitrator_kernel(x_seq, hidden_state, cell_state, params)
    h_T = slab[-1, :, 0:H]
    c_T = slab[-1, :, HP:HP + H]
    return slab, h_T, c_T


# -----------------------------------------------------------------------------
# Demo
# -----------------------------------------------------------------------------
if __name__ == "__main__":
    B, H = 8, 30
    SHARE_UTILITIES = True
    IN = 17 if SHARE_UTILITIES else 11
    T = 4

    key = jax.random.PRNGKey(0)
    kp, kd = jax.random.split(key)
    params = init_params(kp, input_size=IN, hidden=H)

    kconst, *kstep = jax.random.split(kd, T + 1)
    kc = jax.random.split(kconst, 3)
    pool = jax.random.randint(kc[0], (B, 3), 0, 6)
    utilities0 = jax.random.randint(kc[1], (B, 3), 0, 11)
    utilities1 = jax.random.randint(kc[2], (B, 3), 0, 11)

    step_inputs = []
    for t in range(T):
        ks = jax.random.split(kstep[t], 5)
        proposal = jax.random.randint(ks[0], (B, 3), 0, 6)
        message = jax.random.randint(ks[1], (B, 3), 0, 11)
        game_finished = jax.random.randint(ks[2], (B, 1), 0, 2)
        u_enable = jax.random.uniform(ks[3], (B, 1), jnp.float32)
        u_favor = jax.random.uniform(ks[4], (B, 1), jnp.float32)
        step_inputs.append((proposal, message, game_finished, u_enable, u_favor))

    h0 = jnp.zeros((B, H), jnp.float32)
    c0 = jnp.zeros((B, H), jnp.float32)

    # 1) Single-step module forward (ArbitratorModel.forward semantics), chained.
    h_ref, c_ref = h0, c0
    for t, (prop, msg, gf, ue, uf) in enumerate(step_inputs):
        out = arbitrator_forward(
            params, pool, utilities0, utilities1, prop, msg, gf, t,
            h_ref, c_ref, ue, uf, entropy_reg=0.05,
            share_utilities=SHARE_UTILITIES)
        nodes, en_dec, fv_dec, entropy_loss, h_ref, c_ref, stats = out
    jax.block_until_ready((h_ref, c_ref))

    # 2) Fused multi-step path: all T steps in a single pallas_call.
    x_seq = jnp.stack([
        pack_step_input(pool, utilities0, utilities1, prop, msg, gf, t, ue, uf,
                        SHARE_UTILITIES)
        for t, (prop, msg, gf, ue, uf) in enumerate(step_inputs)])
    slab_seq, h_fused, c_fused = arbitrator_forward_sequence(params, x_seq, h0, c0)
    jax.block_until_ready(slab_seq)

    # The fused path must reproduce the chained single-step path.
    np.testing.assert_allclose(np.asarray(h_fused), np.asarray(h_ref),
                               rtol=1e-5, atol=1e-5)
    np.testing.assert_allclose(np.asarray(c_fused), np.asarray(c_ref),
                               rtol=1e-5, atol=1e-5)

    print("KERNEL_OK")
</pallas_src>

<mosaic_0001>
module attributes {stable_mosaic.version = 11 : i64} {
  func.func @_arbitrator_step_kernel(%arg0: i32, %arg1: memref<1x8x128xf32, #tpu.memory_space<vmem>>, %arg2: memref<8x256xf32, #tpu.memory_space<vmem>>, %arg3: memref<512x512xbf16, #tpu.memory_space<vmem>>, %arg4: memref<24x512xf32, #tpu.memory_space<vmem>>, %arg5: memref<1x8x384xf32, #tpu.memory_space<vmem>>, %arg6: memref<8x256xf32, #tpu.memory_space<vmem>>) attributes {dimension_semantics = [#tpu.dimension_semantics<arbitrary>], iteration_bounds = array<i64: 1>, scalar_prefetch = 0 : i64, scratch_operands = 1 : i64, tpu.core_type = #tpu.core_type<tc>, window_params = [{transform_indices = @transform_0, window_bounds = array<i64: 1, 8, 128>}, {pipeline_mode = #tpu.pipeline_mode<synchronous>, transform_indices = @transform_1, window_bounds = array<i64: 8, 256>}, {pipeline_mode = #tpu.pipeline_mode<synchronous>, transform_indices = @transform_2, window_bounds = array<i64: 512, 512>}, {pipeline_mode = #tpu.pipeline_mode<synchronous>, transform_indices = @transform_3, window_bounds = array<i64: 24, 512>}, {transform_indices = @transform_4, window_bounds = array<i64: 1, 8, 384>}]} {
    %c0_i32 = arith.constant 0 : i32
    %0 = arith.cmpi eq, %arg0, %c0_i32 : i32
    %1 = arith.extui %0 : i1 to i32
    %c0_i32_0 = arith.constant 0 : i32
    %2 = arith.cmpi ne, %1, %c0_i32_0 : i32
    scf.if %2 {
      %c0_49 = arith.constant 0 : index
      %c0_50 = arith.constant 0 : index
      %139 = vector.load %arg2[%c0_49, %c0_50] : memref<8x256xf32, #tpu.memory_space<vmem>>, vector<8x256xf32>
      %c0_51 = arith.constant 0 : index
      %c0_52 = arith.constant 0 : index
      %140 = vector.load %arg6[%c0_51, %c0_52] : memref<8x256xf32, #tpu.memory_space<vmem>>, vector<8x256xf32>
      tpu.vector_store %arg6[%c0_51, %c0_52], %139 {strides = array<i32>} : memref<8x256xf32, #tpu.memory_space<vmem>>, vector<8x256xf32>,
    } else {
    }
    %c0 = arith.constant 0 : index
    %c0_1 = arith.constant 0 : index
    %c0_2 = arith.constant 0 : index
    %3 = vector.load %arg1[%c0, %c0_1, %c0_2] : memref<1x8x128xf32, #tpu.memory_space<vmem>>, vector<1x8x128xf32>
    %4 = vector.shape_cast %3 : vector<1x8x128xf32> to vector<8x128xf32>
    %c0_3 = arith.constant 0 : index
    %c0_4 = arith.constant 0 : index
    %5 = vector.load %arg6[%c0_3, %c0_4] : memref<8x256xf32, #tpu.memory_space<vmem>>, vector<8x128xf32>
    %c0_5 = arith.constant 0 : index
    %c128 = arith.constant 128 : index
    %6 = vector.load %arg6[%c0_5, %c128] : memref<8x256xf32, #tpu.memory_space<vmem>>, vector<8x128xf32>
    %7 = arith.truncf %4 : vector<8x128xf32> to vector<8x128xbf16>
    %c0_6 = arith.constant 0 : index
    %c0_7 = arith.constant 0 : index
    %8 = vector.load %arg3[%c0_6, %c0_7] : memref<512x512xbf16, #tpu.memory_space<vmem>>, vector<128x128xbf16>
    %cst = arith.constant dense<0.000000e+00> : vector<8x128xf32>
    %9 = tpu.matmul %7, %8, %cst {dimension_numbers = #tpu.dot_dimension_numbers<[1], [0], [0], [1], [0, 0, 1, 1], [], []>} : vector<8x128xbf16>, vector<128x128xbf16>, vector<8x128xf32> -> vector<8x128xf32>
    %c8 = arith.constant 8 : index
    %c0_8 = arith.constant 0 : index
    %10 = vector.load %arg4[%c8, %c0_8] : memref<24x512xf32, #tpu.memory_space<vmem>>, vector<1x128xf32>
    %11 = vector.broadcast %10 : vector<1x128xf32> to vector<8x128xf32>
    %12 = arith.addf %9, %11 : vector<8x128xf32>
    %cst_9 = arith.constant 0.000000e+00 : f32
    %13 = vector.broadcast %cst_9 : f32 to vector<8x128xf32>
    %14 = arith.maximumf %12, %13 : vector<8x128xf32>
    %15 = arith.truncf %14 : vector<8x128xf32> to vector<8x128xbf16>
    %16 = arith.truncf %5 : vector<8x128xf32> to vector<8x128xbf16>
    %17 = tpu.concatenate %15, %16 in 1 : vector<8x128xbf16>, vector<8x128xbf16> -> vector<8x256xbf16>
    %c128_10 = arith.constant 128 : index
    %c0_11 = arith.constant 0 : index
    %18 = vector.load %arg3[%c128_10, %c0_11] : memref<512x512xbf16, #tpu.memory_space<vmem>>, vector<256x512xbf16>
    %cst_12 = arith.constant dense<0.000000e+00> : vector<8x512xf32>
    %19 = tpu.matmul %17, %18, %cst_12 {dimension_numbers = #tpu.dot_dimension_numbers<[1], [0], [0], [1], [0, 0, 1, 1], [], []>} : vector<8x256xbf16>, vector<256x512xbf16>, vector<8x512xf32> -> vector<8x512xf32>
    %c0_13 = arith.constant 0 : index
    %c0_14 = arith.constant 0 : index
    %20 = vector.load %arg4[%c0_13, %c0_14] : memref<24x512xf32, #tpu.memory_space<vmem>>, vector<1x512xf32>
    %21 = vector.broadcast %20 : vector<1x512xf32> to vector<8x512xf32>
    %22 = arith.addf %19, %21 : vector<8x512xf32>
    %23 = vector.extract_strided_slice %22 {offsets = [0, 0], sizes = [8, 128], strides = [1, 1]} : vector<8x512xf32> to vector<8x128xf32>
    %24 = arith.negf %23 : vector<8x128xf32>
    %25 = math.exp %24 : vector<8x128xf32>
    %cst_15 = arith.constant 1.000000e+00 : f32
    %26 = vector.broadcast %cst_15 : f32 to vector<8x128xf32>
    %27 = arith.addf %26, %25 : vector<8x128xf32>
    %28 = arith.divf %26, %27 : vector<8x128xf32>
    %29 = vector.extract_strided_slice %22 {offsets = [0, 128], sizes = [8, 128], strides = [1, 1]} : vector<8x512xf32> to vector<8x128xf32>
    %30 = arith.negf %29 : vector<8x128xf32>
    %31 = math.exp %30 : vector<8x128xf32>
    %cst_16 = arith.constant 1.000000e+00 : f32
    %32 = vector.broadcast %cst_16 : f32 to vector<8x128xf32>
    %33 = arith.addf %32, %31 : vector<8x128xf32>
    %34 = arith.divf %32, %33 : vector<8x128xf32>
    %35 = vector.extract_strided_slice %22 {offsets = [0, 256], sizes = [8, 128], strides = [1, 1]} : vector<8x512xf32> to vector<8x128xf32>
    %36 = math.tanh %35 : vector<8x128xf32>
    %37 = vector.extract_strided_slice %22 {offsets = [0, 384], sizes = [8, 128], strides = [1, 1]} : vector<8x512xf32> to vector<8x128xf32>
    %38 = arith.negf %37 : vector<8x128xf32>
    %39 = math.exp %38 : vector<8x128xf32>
    %cst_17 = arith.constant 1.000000e+00 : f32
    %40 = vector.broadcast %cst_17 : f32 to vector<8x128xf32>
    %41 = arith.addf %40, %39 : vector<8x128xf32>
    %42 = arith.divf %40, %41 : vector<8x128xf32>
    %43 = arith.mulf %34, %6 : vector<8x128xf32>
    %44 = arith.mulf %28, %36 : vector<8x128xf32>
    %45 = arith.addf %43, %44 : vector<8x128xf32>
    %46 = math.tanh %45 : vector<8x128xf32>
    %47 = arith.mulf %42, %46 : vector<8x128xf32>
    %48 = arith.truncf %47 : vector<8x128xf32> to vector<8x128xbf16>
    %c384 = arith.constant 384 : index
    %c0_18 = arith.constant 0 : index
    %49 = vector.load %arg3[%c384, %c0_18] : memref<512x512xbf16, #tpu.memory_space<vmem>>, vector<128x128xbf16>
    %cst_19 = arith.constant dense<0.000000e+00> : vector<8x128xf32>
    %50 = tpu.matmul %48, %49, %cst_19 {dimension_numbers = #tpu.dot_dimension_numbers<[1], [0], [0], [1], [0, 0, 1, 1], [], []>} : vector<8x128xbf16>, vector<128x128xbf16>, vector<8x128xf32> -> vector<8x128xf32>
    %c16 = arith.constant 16 : index
    %c0_20 = arith.constant 0 : index
    %51 = vector.load %arg4[%c16, %c0_20] : memref<24x512xf32, #tpu.memory_space<vmem>>, vector<1x128xf32>
    %52 = vector.broadcast %51 : vector<1x128xf32> to vector<8x128xf32>
    %53 = arith.addf %50, %52 : vector<8x128xf32>
    %54 = arith.negf %53 : vector<8x128xf32>
    %55 = math.exp %54 : vector<8x128xf32>
    %cst_21 = arith.constant 1.000000e+00 : f32
    %56 = vector.broadcast %cst_21 : f32 to vector<8x128xf32>
    %57 = arith.addf %56, %55 : vector<8x128xf32>
    %58 = arith.divf %56, %57 : vector<8x128xf32>
    %cst_22 = arith.constant 9.99999997E-7 : f32
    %cst_23 = arith.constant 0.999998986 : f32
    %59 = vector.broadcast %cst_22 : f32 to vector<8x128xf32>
    %60 = arith.maximumf %59, %58 : vector<8x128xf32>
    %61 = vector.broadcast %cst_23 : f32 to vector<8x128xf32>
    %62 = arith.minimumf %61, %60 : vector<8x128xf32>
    %63 = math.log %62 : vector<8x128xf32>
    %cst_24 = arith.constant 1.000000e+00 : f32
    %64 = vector.broadcast %cst_24 : f32 to vector<8x128xf32>
    %65 = arith.subf %64, %62 : vector<8x128xf32>
    %66 = math.log %65 : vector<8x128xf32>
    %67 = arith.cmpf olt, %4, %62 : vector<8x128xf32>
    %68 = arith.extui %67 : vector<8x128xi1> to vector<8x128xi32>
    %69 = arith.sitofp %68 : vector<8x128xi32> to vector<8x128xf32>
    %70 = arith.select %67, %63, %66 : vector<8x128xi1>, vector<8x128xf32>
    %cst_25 = arith.constant 5.000000e-01 : f32
    %71 = vector.broadcast %cst_25 : f32 to vector<8x128xf32>
    %72 = arith.cmpf ogt, %62, %71 : vector<8x128xf32>
    %73 = arith.xori %67, %72 : vector<8x128xi1>
    %cst_26 = arith.constant dense<true> : vector<8x128xi1>
    %74 = arith.xori %73, %cst_26 : vector<8x128xi1>
    %75 = arith.extui %74 : vector<8x128xi1> to vector<8x128xi32>
    %76 = arith.sitofp %75 : vector<8x128xi32> to vector<8x128xf32>
    %cst_27 = arith.constant 0.000000e+00 : f32
    %77 = vector.broadcast %cst_27 : f32 to vector<8x128xf32>
    %78 = arith.subf %77, %62 : vector<8x128xf32>
    %79 = arith.mulf %78, %63 : vector<8x128xf32>
    %cst_28 = arith.constant 1.000000e+00 : f32
    %80 = vector.broadcast %cst_28 : f32 to vector<8x128xf32>
    %81 = arith.subf %80, %62 : vector<8x128xf32>
    %82 = arith.mulf %81, %66 : vector<8x128xf32>
    %83 = arith.subf %79, %82 : vector<8x128xf32>
    %84 = tpu.iota {dimensions = array<i32: 1>} : vector<8x128xi32>
    %85 = vector.extract_strided_slice %4 {offsets = [0, 10], sizes = [8, 1], strides = [1, 1]} : vector<8x128xf32> to vector<8x1xf32>
    %cst_29 = arith.constant 5.000000e-01 : f32
    %86 = vector.broadcast %cst_29 : f32 to vector<8x1xf32>
    %87 = arith.cmpf ogt, %85, %86 : vector<8x1xf32>
    %88 = vector.extract_strided_slice %67 {offsets = [0, 0], sizes = [8, 1], strides = [1, 1]} : vector<8x128xi1> to vector<8x1xi1>
    %c2_i32 = arith.constant 2 : i32
    %c0_i32_30 = arith.constant 0 : i32
    %89 = arith.cmpi eq, %c2_i32, %c0_i32_30 : i32
    %c1_i32 = arith.constant 1 : i32
    %90 = arith.select %89, %c1_i32, %c2_i32 : i32
    %91 = vector.broadcast %90 : i32 to vector<8x128xi32>
    %92 = arith.remsi %84, %91 : vector<8x128xi32>
    %c0_i32_31 = arith.constant 0 : i32
    %93 = vector.broadcast %c0_i32_31 : i32 to vector<8x128xi32>
    %94 = arith.cmpi ne, %92, %93 : vector<8x128xi32>
    %c0_i32_32 = arith.constant 0 : i32
    %95 = vector.broadcast %c0_i32_32 : i32 to vector<8x128xi32>
    %96 = arith.cmpi slt, %92, %95 : vector<8x128xi32>
    %c0_i32_33 = arith.constant 0 : i32
    %97 = arith.cmpi slt, %90, %c0_i32_33 : i32
    %98 = vector.broadcast %97 : i1 to vector<8x128xi1>
    %99 = vector.broadcast %98 : vector<8x128xi1> to vector<8x128xi1>
    %100 = arith.xori %96, %99 : vector<8x128xi1>
    %101 = arith.andi %100, %94 : vector<8x128xi1>
    %102 = vector.broadcast %90 : i32 to vector<8x128xi32>
    %103 = arith.addi %92, %102 : vector<8x128xi32>
    %104 = arith.select %101, %103, %92 : vector<8x128xi1>, vector<8x128xi32>
    %c0_i32_34 = arith.constant 0 : i32
    %105 = vector.broadcast %c0_i32_34 : i32 to vector<8x128xi32>
    %106 = arith.cmpi eq, %104, %105 : vector<8x128xi32>
    %107 = vector.broadcast %88 : vector<8x1xi1> to vector<8x128xi1>
    %108 = arith.ori %106, %107 : vector<8x128xi1>
    %109 = vector.broadcast %87 : vector<8x1xi1> to vector<8x128xi1>
    %110 = arith.andi %109, %108 : vector<8x128xi1>
    %c10_i32 = arith.constant 10 : i32
    %111 = vector.broadcast %c10_i32 : i32 to vector<8x128xi32>
    %112 = arith.cmpi slt, %84, %111 : vector<8x128xi32>
    %113 = arith.andi %110, %112 : vector<8x128xi1>
    %c2_i32_35 = arith.constant 2 : i32
    %114 = vector.broadcast %c2_i32_35 : i32 to vector<8x128xi32>
    %115 = arith.cmpi slt, %84, %114 : vector<8x128xi32>
    %c4_i32 = arith.constant 4 : i32
    %116 = vector.broadcast %c4_i32 : i32 to vector<8x128xi32>
    %117 = arith.cmpi slt, %84, %116 : vector<8x128xi32>
    %c6_i32 = arith.constant 6 : i32
    %118 = vector.broadcast %c6_i32 : i32 to vector<8x128xi32>
    %119 = arith.cmpi slt, %84, %118 : vector<8x128xi32>
    %c8_i32 = arith.constant 8 : i32
    %120 = vector.broadcast %c8_i32 : i32 to vector<8x128xi32>
    %121 = arith.cmpi slt, %84, %120 : vector<8x128xi32>
    %122 = arith.select %121, %76, %83 : vector<8x128xi1>, vector<8x128xf32>
    %123 = arith.select %119, %62, %122 : vector<8x128xi1>, vector<8x128xf32>
    %124 = arith.select %117, %69, %123 : vector<8x128xi1>, vector<8x128xf32>
    %125 = arith.select %115, %70, %124 : vector<8x128xi1>, vector<8x128xf32>
    %cst_36 = arith.constant 0.000000e+00 : f32
    %126 = vector.broadcast %cst_36 : f32 to vector<8x128xf32>
    %127 = arith.select %113, %125, %126 : vector<8x128xi1>, vector<8x128xf32>
    %c0_37 = arith.constant 0 : index
    %c0_38 = arith.constant 0 : index
    %128 = vector.load %arg6[%c0_37, %c0_38] : memref<8x256xf32, #tpu.memory_space<vmem>>, vector<8x128xf32>
    tpu.vector_store %arg6[%c0_37, %c0_38], %47 {strides = array<i32>} : memref<8x256xf32, #tpu.memory_space<vmem>>, vector<8x128xf32>,
    %c0_39 = arith.constant 0 : index
    %c128_40 = arith.constant 128 : index
    %129 = vector.load %arg6[%c0_39, %c128_40] : memref<8x256xf32, #tpu.memory_space<vmem>>, vector<8x128xf32>
    tpu.vector_store %arg6[%c0_39, %c128_40], %45 {strides = array<i32>} : memref<8x256xf32, #tpu.memory_space<vmem>>, vector<8x128xf32>,
    %c0_41 = arith.constant 0 : index
    %c0_42 = arith.constant 0 : index
    %c0_43 = arith.constant 0 : index
    %130 = vector.load %arg5[%c0_41, %c0_42, %c0_43] : memref<1x8x384xf32, #tpu.memory_space<vmem>>, vector<1x8x128xf32>
    %131 = vector.shape_cast %130 : vector<1x8x128xf32> to vector<8x128xf32>
    %132 = vector.shape_cast %47 : vector<8x128xf32> to vector<1x8x128xf32>
    tpu.vector_store %arg5[%c0_41, %c0_42, %c0_43], %132 {strides = array<i32>} : memref<1x8x384xf32, #tpu.memory_space<vmem>>, vector<1x8x128xf32>,
    %c0_44 = arith.constant 0 : index
    %c0_45 = arith.constant 0 : index
    %c128_46 = arith.constant 128 : index
    %133 = vector.load %arg5[%c0_44, %c0_45, %c128_46] : memref<1x8x384xf32, #tpu.memory_space<vmem>>, vector<1x8x128xf32>
    %134 = vector.shape_cast %133 : vector<1x8x128xf32> to vector<8x128xf32>
    %135 = vector.shape_cast %45 : vector<8x128xf32> to vector<1x8x128xf32>
    tpu.vector_store %arg5[%c0_44, %c0_45, %c128_46], %135 {strides = array<i32>} : memref<1x8x384xf32, #tpu.memory_space<vmem>>, vector<1x8x128xf32>,
    %c0_47 = arith.constant 0 : index
    %c0_48 = arith.constant 0 : index
    %c256 = arith.constant 256 : index
    %136 = vector.load %arg5[%c0_47, %c0_48, %c256] : memref<1x8x384xf32, #tpu.memory_space<vmem>>, vector<1x8x128xf32>
    %137 = vector.shape_cast %136 : vector<1x8x128xf32> to vector<8x128xf32>
    %138 = vector.shape_cast %127 : vector<8x128xf32> to vector<1x8x128xf32>
    tpu.vector_store %arg5[%c0_47, %c0_48, %c256], %138 {strides = array<i32>} : memref<1x8x384xf32, #tpu.memory_space<vmem>>, vector<1x8x128xf32>,
    return
  }
  func.func @transform_0(%arg0: i32) -> (i32, i32, i32) {
    %c0_i32 = arith.constant 0 : i32
    %c0_i32_0 = arith.constant 0 : i32
    %c0_i32_1 = arith.constant 0 : i32
    return %arg0, %c0_i32, %c0_i32_0 : i32, i32, i32
  }
  func.func @transform_1(%arg0: i32) -> (i32, i32) {
    %c0_i32 = arith.constant 0 : i32
    %c0_i32_0 = arith.constant 0 : i32
    %c0_i32_1 = arith.constant 0 : i32
    return %c0_i32, %c0_i32_0 : i32, i32
  }
  func.func @transform_2(%arg0: i32) -> (i32, i32) {
    %c0_i32 = arith.constant 0 : i32
    %c0_i32_0 = arith.constant 0 : i32
    %c0_i32_1 = arith.constant 0 : i32
    return %c0_i32, %c0_i32_0 : i32, i32
  }
  func.func @transform_3(%arg0: i32) -> (i32, i32) {
    %c0_i32 = arith.constant 0 : i32
    %c0_i32_0 = arith.constant 0 : i32
    %c0_i32_1 = arith.constant 0 : i32
    return %c0_i32, %c0_i32_0 : i32, i32
  }
  func.func @transform_4(%arg0: i32) -> (i32, i32, i32) {
    %c0_i32 = arith.constant 0 : i32
    %c0_i32_0 = arith.constant 0 : i32
    %c0_i32_1 = arith.constant 0 : i32
    return %arg0, %c0_i32, %c0_i32_0 : i32, i32, i32
  }
}

</mosaic_0001>

<bundles_post_ra>
// kernel: tpu_custom_call.1
= control target key start
LH: loop header
LB: loop body
LE: loop exit
PB: predicated region body
PF: predicated region fallthrough
CT: control target
= control target key end

     0   :  { %9 = vsyncpa [#allocation4], 0  ;;  %s1451_s0 = inlined_call_operand.hbm [shape: f32[1,8,128], index: 0, kind: input, shape index: {}]   ;;  %s1452_s1 = inlined_call_operand.hbm [shape: f32[8,256], index: 1, kind: input, shape index: {}]   ;;  %s1453_s2 = inlined_call_operand.hbm [shape: bf16[512,512], index: 2, kind: input, shape index: {}]   ;;  %s1454_s3 = inlined_call_operand.hbm [shape: f32[24,512], index: 3, kind: input, shape index: {}]   ;;  %s1455_s4 = inlined_call_operand.hbm [shape: f32[1,8,384], index: 4, kind: output, shape index: {}]  }
   0x1   :  { %10 = vsyncpa [#allocation7], 0 }
   0x2   :  { %11 = vsyncpa [#allocation10], 0 }
   0x3   :  { %12 = vsyncpa [#allocation5], 0  ;;  %s1308_s15 = smov [#allocation6]   ;;  %s1309_s17 = smov [#allocation3]  }
   0x4   :  { %s29_s16 = sshll.u32 %s1308_s15, 4  ;;  %s19_s18 = sshll.u32 %s1309_s17, 4  ;;  %s30_s16 = int_to_ptr.vmem [resolvable:$true] %s29_s16  ;;  %s20_s18 = int_to_ptr.vmem [resolvable:$true] %s19_s18 }
   0x5   :  { %s1190_s21 = scalar_lea.hbm %s1452_s1, 256 }
   0x6   :  { %p1191_p0 = scmp.ne.s32.totalorder %s1452_s1, %s1190_s21  ;;  %p1194_p1 = scmp.lt.u32.totalorder %s1190_s21, %s1452_s1 }
   0x8   :  { %p1196_p2 = pnand %p1194_p1, %p1191_p0 }
   0xa   :  { %1199 = shalt.err (!%p1196_p2)
}
   0xb   :  { %s1200_s26 = scalar_lea.vmem %s30_s16, 256  ;;  %p1205_p4 = scmp.lt.s32.totalorder %s30_s16, %s30_s16 }
   0xc   :  { %p1201_p3 = scmp.ne.s32.totalorder %s30_s16, %s1200_s26  ;;  %p1206_p5 = scmp.lt.s32.totalorder %s1200_s26, %s1200_s26 }
   0xe   :  { %p1207_p6 = por %p1206_p5, %p1205_p4 }
  0x10   :  { %p1208_p7 = pnand %p1207_p6, %p1201_p3 }
  0x12   :  { %1211 = shalt.err (!%p1208_p7)
}
  0x13   :  { %32 = dma.hbm_to_vmem [thread:$0]  %s1452_s1, 256, %s30_s16, [#allocation7]  }
  0x14   :  { %s1212_s5 = scalar_lea.hbm %s1451_s0, 128 }
  0x15   :  { %p1213_p8 = scmp.ne.s32.totalorder %s1451_s0, %s1212_s5  ;;  %p1216_p9 = scmp.lt.u32.totalorder %s1212_s5, %s1451_s0 }
  0x17   :  { %p1218_p10 = pnand %p1216_p9, %p1213_p8 }
  0x19   :  { %1221 = shalt.err (!%p1218_p10)
}
  0x1a   :  { %s1222_s10 = scalar_lea.vmem %s20_s18, 128  ;;  %p1227_p12 = scmp.lt.s32.totalorder %s20_s18, %s20_s18 }
  0x1b   :  { %p1223_p11 = scmp.ne.s32.totalorder %s20_s18, %s1222_s10  ;;  %p1228_p13 = scmp.lt.s32.totalorder %s1222_s10, %s1222_s10 }
  0x1d   :  { %p1229_p0 = por %p1228_p13, %p1227_p12 }
  0x1f   :  { %p1230_p1 = pnand %p1229_p0, %p1223_p11 }
  0x21   :  { %1233 = shalt.err (!%p1230_p1)
}
  0x22   :  { %22 = dma.hbm_to_vmem [thread:$0]  %s1451_s0, 128, %s20_s18, [#allocation4]  }
  0x23   :  { %s1310_s12 = smov [#allocation8]   ;;  %s1234_s16 = scalar_lea.hbm %s1453_s2, 16384 }
  0x24   :  { %s38_s13 = sshll.u32 %s1310_s12, 4  ;;  %p1235_p2 = scmp.ne.s32.totalorder %s1453_s2, %s1234_s16  ;;  %s39_s13 = int_to_ptr.vmem [resolvable:$true] %s38_s13 }
  0x25   :  { %p1238_p3 = scmp.lt.u32.totalorder %s1234_s16, %s1453_s2 }
  0x27   :  { %p1240_p4 = pnand %p1238_p3, %p1235_p2 }
  0x29   :  { %1243 = shalt.err (!%p1240_p4)
}
  0x2a   :  { %s1244_s22 = scalar_lea.vmem %s39_s13, 16384  ;;  %p1249_p6 = scmp.lt.s32.totalorder %s39_s13, %s39_s13 }
  0x2b   :  { %p1245_p5 = scmp.ne.s32.totalorder %s39_s13, %s1244_s22  ;;  %p1250_p7 = scmp.lt.s32.totalorder %s1244_s22, %s1244_s22 }
  0x2d   :  { %p1251_p8 = por %p1250_p7, %p1249_p6 }
  0x2f   :  { %p1252_p9 = pnand %p1251_p8, %p1245_p5 }
  0x31   :  { %1255 = shalt.err (!%p1252_p9)
}
  0x32   :  { %s1311_s0 = smov 256   ;;  %s1312_s18 = smov 16  }
  0x33   :  { %44 = dma.hbm_to_vmem [thread:$0]  %s1453_s2, 16384, %s39_s13, [#allocation7], %s1311_s0, %s1311_s0, %s1312_s18  }
  0x34   :  { %s1313_s25 = smov [#allocation9]   ;;  %s1256_s29 = scalar_lea.hbm %s1454_s3, 1536 }
  0x35   :  { %s50_s26 = sshll.u32 %s1313_s25, 4  ;;  %p1257_p10 = scmp.ne.s32.totalorder %s1454_s3, %s1256_s29  ;;  %s51_s26 = int_to_ptr.vmem [resolvable:$true] %s50_s26 }
  0x36   :  { %p1260_p11 = scmp.lt.u32.totalorder %s1256_s29, %s1454_s3 }
  0x38   :  { %p1262_p12 = pnand %p1260_p11, %p1257_p10 }
  0x3a   :  { %1265 = shalt.err (!%p1262_p12)
}
  0x3b   :  { %s1266_s8 = scalar_lea.vmem %s51_s26, 1536  ;;  %p1271_p0 = scmp.lt.s32.totalorder %s51_s26, %s51_s26 }
  0x3c   :  { %p1267_p13 = scmp.ne.s32.totalorder %s51_s26, %s1266_s8  ;;  %p1272_p1 = scmp.lt.s32.totalorder %s1266_s8, %s1266_s8 }
  0x3e   :  { %p1273_p2 = por %p1272_p1, %p1271_p0 }
  0x40   :  { %p1274_p3 = pnand %p1273_p2, %p1267_p13 }
  0x42   :  { %1277 = shalt.err (!%p1274_p3)
}
  0x43   :  { %s1314_s2 = smov 512   ;;  %s1315_s9 = smov 32  }
  0x44   :  { %56 = dma.hbm_to_vmem [thread:$0]  %s1454_s3, 1536, %s51_s26, [#allocation10], %s1314_s2, %s1314_s2, %s1315_s9  }
  0x45   :  { %1300 = dma.done.wait [#allocation4], 128  }
  0x46   :  { %1301 = vsyncadd [#allocation4], 4294967168 }
  0x47   :  { %1302 = dma.done.wait [#allocation7], 16640  }
  0x48   :  { %1303 = vsyncadd [#allocation7], 4294950656 }
  0x49   :  { %1304 = dma.done.wait [#allocation10], 1536  }
  0x4a   :  { %1305 = vsyncadd [#allocation10], 4294965760  ;;  %v1316_v0 = vmov 0.0   ;;  %vm1317_vm0 = vmmov 0   ;;  %v1054_v1 = vld [vmem:[#allocation8] ss:$16 sps:$4 sm:$0xff]  }
  0x4b   :  { %998 = vmatprep.subr.bf16.mxu0 %v1316_v0  ;;  %1014 = vmatprep.mubr.msk.bf16.mxu0 %vm1317_vm0, %v1316_v0  ;;  %v1055_v2 = vld [vmem:[#allocation8 + $0x20] ss:$16 sps:$4 sm:$0xff]   ;;  %v1062_v4 = vld [vmem:[#allocation8 + $0x104] ss:$16 sps:$4 sm:$0xff]   ;;  %v1404_v20 = vld [vmem:[#allocation3] sm:$0xff]  ;;  %vm1320_vm5 = vmmov 1  }
  0x4c   :  { %999 = vmatpush3.bf16.msra.mxu0 %v1054_v1  ;;  %v1056_v3 = vld [vmem:[#allocation8 + $0x40] ss:$16 sps:$4 sm:$0xff]   ;;  %596 = vmatprep.subr.bf16.mxu1 %v1062_v4  ;;  %v1068_v7 = vld [vmem:[#allocation8 + $0x124] ss:$16 sps:$4 sm:$0xff]   ;;  %v1066_v21 = vld [vmem:[#allocation8 + $0x10c] ss:$16 sps:$4 sm:$0xff]   ;;  %v81_v23 = vpack.c.bf16 %v1404_v20, %v1404_v20 }
  0x4d   :  { %1000 = vmatprep.subr.bf16.mxu0 %v1316_v0  ;;  %v1057_v5 = vld [vmem:[#allocation8 + $0x60] ss:$16 sps:$4 sm:$0xff]   ;;  %v1074_v10 = vld [vmem:[#allocation8 + $0x144] ss:$16 sps:$4 sm:$0xff]   ;;  %v1064_v25 = vld [vmem:[#allocation8 + $0x108] ss:$16 sps:$4 sm:$0xff]  }
  0x4e   :  { %v1067_v6 = vld [vmem:[#allocation8 + $0x100] ss:$16 sps:$4 sm:$0xff]   ;;  %v1080_v12 = vld [vmem:[#allocation8 + $0x164] ss:$16 sps:$4 sm:$0xff]   ;;  %v1072_v26 = vld [vmem:[#allocation8 + $0x12c] ss:$16 sps:$4 sm:$0xff]  }
  0x4f   :  { %597 = vmatpush1.bf16.msra.mxu1 %v1067_v6  ;;  %v1058_v8 = vld [vmem:[#allocation8 + $0x80] ss:$16 sps:$4 sm:$0xff]   ;;  %v1086_v15 = vld [vmem:[#allocation8 + $0x184] ss:$16 sps:$4 sm:$0xff]   ;;  %v1070_v29 = vld [vmem:[#allocation8 + $0x128] ss:$16 sps:$4 sm:$0xff]  }
  0x50   :  { %1001 = vmatpush3.bf16.msra.mxu0 %v1055_v2  ;;  %598 = vmatprep.subr.bf16.mxu1 %v1068_v7  ;;  %v1073_v9 = vld [vmem:[#allocation8 + $0x120] ss:$16 sps:$4 sm:$0xff]   ;;  %v1092_v18 = vld [vmem:[#allocation8 + $0x1a4] ss:$16 sps:$4 sm:$0xff]   ;;  %v1078_v30 = vld [vmem:[#allocation8 + $0x14c] ss:$16 sps:$4 sm:$0xff]  }
  0x51   :  { %1002 = vmatprep.subr.bf16.mxu0 %v1316_v0  ;;  %v1079_v11 = vld [vmem:[#allocation8 + $0x140] ss:$16 sps:$4 sm:$0xff]   ;;  %v1098_v24 = vld [vmem:[#allocation8 + $0x1c4] ss:$16 sps:$4 sm:$0xff]   ;;  %v1076_v33 = vld [vmem:[#allocation8 + $0x148] ss:$16 sps:$4 sm:$0xff]  }
  0x52   :  { %v1059_v13 = vld [vmem:[#allocation8 + $0xa0] ss:$16 sps:$4 sm:$0xff]   ;;  %v1104_v28 = vld [vmem:[#allocation8 + $0x1e4] ss:$16 sps:$4 sm:$0xff]   ;;  %v1084_v34 = vld [vmem:[#allocation8 + $0x16c] ss:$16 sps:$4 sm:$0xff]  }
  0x53   :  { %599 = vmatpush1.bf16.msra.mxu1 %v1073_v9  ;;  %v1085_v14 = vld [vmem:[#allocation8 + $0x160] ss:$16 sps:$4 sm:$0xff]   ;;  %v1110_v32 = vld [vmem:[#allocation8 + $0x204] ss:$16 sps:$4 sm:$0xff]   ;;  %v1082_v37 = vld [vmem:[#allocation8 + $0x168] ss:$16 sps:$4 sm:$0xff]  }
  0x54   :  { %1003 = vmatpush3.bf16.msra.mxu0 %v1056_v3  ;;  %600 = vmatprep.subr.bf16.mxu1 %v1074_v10  ;;  %v1060_v16 = vld [vmem:[#allocation8 + $0xc0] ss:$16 sps:$4 sm:$0xff]   ;;  %v1116_v36 = vld [vmem:[#allocation8 + $0x224] ss:$16 sps:$4 sm:$0xff]   ;;  %v1090_v38 = vld [vmem:[#allocation8 + $0x18c] ss:$16 sps:$4 sm:$0xff]  }
  0x55   :  { %1004 = vmatprep.subr.bf16.mxu0 %v1316_v0  ;;  %v1091_v17 = vld [vmem:[#allocation8 + $0x180] ss:$16 sps:$4 sm:$0xff]   ;;  %v1122_v40 = vld [vmem:[#allocation8 + $0x244] ss:$16 sps:$4 sm:$0xff]   ;;  %v1088_v41 = vld [vmem:[#allocation8 + $0x188] ss:$16 sps:$4 sm:$0xff]  }
  0x56   :  { %v1061_v19 = vld [vmem:[#allocation8 + $0xe0] ss:$16 sps:$4 sm:$0xff]   ;;  %v1096_v42 = vld [vmem:[#allocation8 + $0x1ac] ss:$16 sps:$4 sm:$0xff]   ;;  %v1094_v44 = vld [vmem:[#allocation8 + $0x1a8] ss:$16 sps:$4 sm:$0xff]  }
  0x57   :  { %601 = vmatpush1.bf16.msra.mxu1 %v1079_v11  ;;  %v1097_v22 = vld [vmem:[#allocation8 + $0x1a0] ss:$16 sps:$4 sm:$0xff]   ;;  %v1128_v45 = vld [vmem:[#allocation8 + $0x264] ss:$16 sps:$4 sm:$0xff]   ;;  %v1102_v46 = vld [vmem:[#allocation8 + $0x1cc] ss:$16 sps:$4 sm:$0xff]  }
  0x58   :  { %1005 = vmatpush3.bf16.msra.mxu0 %v1057_v5  ;;  %602 = vmatprep.subr.bf16.mxu1 %v1080_v12  ;;  %v1103_v27 = vld [vmem:[#allocation8 + $0x1c0] ss:$16 sps:$4 sm:$0xff]   ;;  %v1134_v48 = vld [vmem:[#allocation8 + $0x284] ss:$16 sps:$4 sm:$0xff]   ;;  %v1100_v49 = vld [vmem:[#allocation8 + $0x1c8] ss:$16 sps:$4 sm:$0xff]  }
  0x59   :  { %1006 = vmatprep.subr.bf16.mxu0 %v1316_v0  ;;  %v1109_v31 = vld [vmem:[#allocation8 + $0x1e0] ss:$16 sps:$4 sm:$0xff]   ;;  %v1108_v50 = vld [vmem:[#allocation8 + $0x1ec] ss:$16 sps:$4 sm:$0xff]   ;;  %v1140_v52 = vld [vmem:[#allocation8 + $0x2a4] ss:$16 sps:$4 sm:$0xff]  }
  0x5a   :  { %v1115_v35 = vld [vmem:[#allocation8 + $0x200] ss:$16 sps:$4 sm:$0xff]   ;;  %v1106_v53 = vld [vmem:[#allocation8 + $0x1e8] ss:$16 sps:$4 sm:$0xff]   ;;  %v1114_v54 = vld [vmem:[#allocation8 + $0x20c] ss:$16 sps:$4 sm:$0xff]  }
  0x5b   :  { %603 = vmatpush1.bf16.msra.mxu1 %v1085_v14  ;;  %v1121_v39 = vld [vmem:[#allocation8 + $0x220] ss:$16 sps:$4 sm:$0xff]   ;;  %v1146_v56 = vld [vmem:[#allocation8 + $0x2c4] ss:$16 sps:$4 sm:$0xff]   ;;  %v1112_v57 = vld [vmem:[#allocation8 + $0x208] ss:$16 sps:$4 sm:$0xff]  }
  0x5c   :  { %1007 = vmatpush3.bf16.msra.mxu0 %v1058_v8  ;;  %604 = vmatprep.subr.bf16.mxu1 %v1086_v15  ;;  %v1127_v43 = vld [vmem:[#allocation8 + $0x240] ss:$16 sps:$4 sm:$0xff]   ;;  %v1120_v58 = vld [vmem:[#allocation8 + $0x22c] ss:$16 sps:$4 sm:$0xff]   ;;  %v1118_v59 = vld [vmem:[#allocation8 + $0x228] ss:$16 sps:$4 sm:$0xff]  }
  0x5d   :  { %1008 = vmatprep.subr.bf16.mxu0 %v1316_v0  ;;  %v1133_v47 = vld [vmem:[#allocation8 + $0x260] ss:$16 sps:$4 sm:$0xff]   ;;  %v1126_v60 = vld [vmem:[#allocation8 + $0x24c] ss:$16 sps:$4 sm:$0xff]   ;;  %v1124_v61 = vld [vmem:[#allocation8 + $0x248] ss:$16 sps:$4 sm:$0xff]  }
  0x5e   :  { %v1139_v51 = vld [vmem:[#allocation8 + $0x280] ss:$16 sps:$4 sm:$0xff]   ;;  %v1132_v62 = vld [vmem:[#allocation8 + $0x26c] ss:$16 sps:$4 sm:$0xff]   ;;  %v1130_v63 = vld [vmem:[#allocation8 + $0x268] ss:$16 sps:$4 sm:$0xff]  }
  0x5f   :  { %605 = vmatpush1.bf16.msra.mxu1 %v1091_v17  ;;  %v1145_v55 = vld [vmem:[#allocation8 + $0x2a0] ss:$16 sps:$4 sm:$0xff]   ;;  %v1138_v1 = vld [vmem:[#allocation8 + $0x28c] ss:$16 sps:$4 sm:$0xff]   ;;  %v1136_v2 = vld [vmem:[#allocation8 + $0x288] ss:$16 sps:$4 sm:$0xff]  }
  0x60   :  { %1009 = vmatpush3.bf16.msra.mxu0 %v1059_v13  ;;  %606 = vmatprep.subr.bf16.mxu1 %v1092_v18  ;;  %v1144_v3 = vld [vmem:[#allocation8 + $0x2ac] ss:$16 sps:$4 sm:$0xff]   ;;  %v1142_v4 = vld [vmem:[#allocation8 + $0x2a8] ss:$16 sps:$4 sm:$0xff]   ;;  %v1151_v7 = vld [vmem:[#allocation8 + $0x2c0] ss:$16 sps:$4 sm:$0xff]  }
  0x61   :  { %1010 = vmatprep.subr.bf16.mxu0 %v1316_v0  ;;  %v1150_v5 = vld [vmem:[#allocation8 + $0x2cc] ss:$16 sps:$4 sm:$0xff]   ;;  %v1148_v6 = vld [vmem:[#allocation8 + $0x2c8] ss:$16 sps:$4 sm:$0xff]   ;;  %v1152_v8 = vld [vmem:[#allocation8 + $0x2e4] ss:$16 sps:$4 sm:$0xff]  }
  0x62   :  { %v1156_v9 = vld [vmem:[#allocation8 + $0x2ec] ss:$16 sps:$4 sm:$0xff]   ;;  %v1154_v10 = vld [vmem:[#allocation8 + $0x2e8] ss:$16 sps:$4 sm:$0xff]   ;;  %v1157_v11 = vld [vmem:[#allocation8 + $0x2e0] ss:$16 sps:$4 sm:$0xff]  }
  0x63   :  { %607 = vmatpush1.bf16.msra.mxu1 %v1097_v22  ;;  %v74_v12 = vld [vmem:[#allocation6] sm:$0xff]  ;;  %v98_v14 = vld [vmem:[#allocation9 + $0x20] ss:$0 sm:$0xff]  ;;  %vm836_vm4 = vcmp.gt.f32.partialorder %v1404_v20, 0.5  ;;  %s1321_s3 = smov [#allocation11]  }
  0x64   :  { %1011 = vmatpush3.bf16.msra.mxu0 %v1060_v16  ;;  %608 = vmatprep.subr.bf16.mxu1 %v1098_v24  ;;  %v189_v13 = vpack.c.bf16 %v74_v12, %v74_v12  ;;  %v1159_v24 = vld [vmem:[#allocation8 + $0x320] ss:$16 sps:$4 sm:$0xff]   ;;  %s883_s11 = sshll.u32 %s1321_s3, 4  ;;  %s884_s11 = int_to_ptr.vmem [resolvable:$true] %s883_s11 }
  0x65   :  { %1012 = vmatprep.subr.bf16.mxu0 %v1316_v0  ;;  %v719_v12 = vld [vmem:[#allocation9 + $0x40] ss:$0 sm:$0xff]  ;;  %s1278_s12 = scalar_lea.vmem %s884_s11, 384  ;;  %p1283_p5 = scmp.lt.s32.totalorder %s884_s11, %s884_s11 }
  0x66   :  { %628 = vmatprep.mubr.bf16.mxu1 %v189_v13  ;;  %p1279_p4 = scmp.ne.s32.totalorder %s884_s11, %s1278_s12  ;;  %p1284_p6 = scmp.lt.s32.totalorder %s1278_s12, %s1278_s12 }
  0x67   :  { %609 = vmatpush1.bf16.msra.mxu1 %v1103_v27  ;;  %v1162_v27 = vld [vmem:[#allocation8 + $0x380] ss:$16 sps:$4 sm:$0xff]  }
  0x68   :  { %1013 = vmatpush3.bf16.msra.mxu0 %v1061_v19  ;;  %610 = vmatprep.subr.bf16.mxu1 %v1104_v28  ;;  %v1163_v28 = vld [vmem:[#allocation8 + $0x3a0] ss:$16 sps:$4 sm:$0xff]   ;;  %p1285_p7 = por %p1284_p6, %p1283_p5 }
  0x69   :  { %637 = vmatprep.subr.bf16.mxu0 %v1066_v21 }
  0x6a   :  { %p1286_p8 = pnand %p1285_p7, %p1279_p4 }
  0x6b   :  { %1015 = vmatmul.mubr.bf16.vlgmr.msra.gmra.mrb[0].mxu0 %v81_v23  ;;  %611 = vmatpush1.bf16.msra.mxu1 %v1109_v31  ;;  %v1158_v23 = vld [vmem:[#allocation8 + $0x300] ss:$16 sps:$4 sm:$0xff]   ;;  %v256_v31 = vlaneseq }
  0x6c   :  { %638 = vmatpush1.bf16.msra.mxu0 %v1064_v25  ;;  %612 = vmatprep.subr.bf16.mxu1 %v1110_v32  ;;  %v1160_v25 = vld [vmem:[#allocation8 + $0x340] ss:$16 sps:$4 sm:$0xff]  }
  0x6d   :  { %639 = vmatprep.subr.bf16.mxu0 %v1072_v26  ;;  %669 = vmatprep.mubr.bf16.mxu0 %v189_v13  ;;  %v1161_v26 = vld [vmem:[#allocation8 + $0x360] ss:$16 sps:$4 sm:$0xff]   ;;  %v257_v32 = vshrl.u32 %v256_v31, 7 }
  0x6f   :  { %613 = vmatpush1.bf16.msra.mxu1 %v1115_v35  ;;  %v262_v35 = vsub.s32 1, %v257_v32 }
  0x70   :  { %640 = vmatpush1.bf16.msra.mxu0 %v1070_v29  ;;  %614 = vmatprep.subr.bf16.mxu1 %v1116_v36  ;;  %v1164_v29 = vld [vmem:[#allocation8 + $0x3c0] ss:$16 sps:$4 sm:$0xff]  }
  0x71   :  { %641 = vmatprep.subr.bf16.mxu0 %v1078_v30  ;;  %v1165_v30 = vld [vmem:[#allocation8 + $0x3e0] ss:$16 sps:$4 sm:$0xff]  }
  0x73   :  { %615 = vmatpush1.bf16.msra.mxu1 %v1121_v39 }
  0x74   :  { %642 = vmatpush1.bf16.msra.mxu0 %v1076_v33  ;;  %616 = vmatprep.subr.bf16.mxu1 %v1122_v40  ;;  %v258_v33 = vsub.s32 0, %v257_v32  ;;  %v270_v40 = vsub.s32 3, %v257_v32 }
  0x75   :  { %643 = vmatprep.subr.bf16.mxu0 %v1084_v34  ;;  %v254_v34 = vld [vmem:[#allocation9] ss:$8 sm:$0xf] }
  0x76   :  { %v259_v36 = vrot.slane %v254_v34, %v258_v33 }
  0x77   :  { %617 = vmatpush1.bf16.msra.mxu1 %v1127_v43 }
  0x78   :  { %644 = vmatpush1.bf16.msra.mxu0 %v1082_v37  ;;  %618 = vmatprep.subr.bf16.mxu1 %v1128_v45  ;;  %v263_v37 = vrot.slane %v254_v34, %v262_v35 }
  0x79   :  { %645 = vmatprep.subr.bf16.mxu0 %v1090_v38 }
  0x7b   :  { %619 = vmatpush1.bf16.msra.mxu1 %v1133_v47 }
  0x7c   :  { %646 = vmatpush1.bf16.msra.mxu0 %v1088_v41  ;;  %620 = vmatprep.subr.bf16.mxu1 %v1134_v48 }
  0x7d   :  { %647 = vmatprep.subr.bf16.mxu0 %v1096_v42 }
  0x7f   :  { %621 = vmatpush1.bf16.msra.mxu1 %v1139_v51  ;;  %v271_v51 = vrot.slane %v254_v34, %v270_v40 }
  0x80   :  { %648 = vmatpush1.bf16.msra.mxu0 %v1094_v44  ;;  %622 = vmatprep.subr.bf16.mxu1 %v1140_v52  ;;  %v266_v52 = vsub.s32 2, %v257_v32 }
  0x81   :  { %649 = vmatprep.subr.bf16.mxu0 %v1102_v46 }
  0x83   :  { %623 = vmatpush1.bf16.msra.mxu1 %v1145_v55 }
  0x84   :  { %650 = vmatpush1.bf16.msra.mxu0 %v1100_v49  ;;  %624 = vmatprep.subr.bf16.mxu1 %v1146_v56 }
  0x85   :  { %651 = vmatprep.subr.bf16.mxu0 %v1108_v50 }
  0x87   :  { %625 = vmatpush1.bf16.msra.mxu1 %v1151_v7 }
  0x88   :  { %652 = vmatpush1.bf16.msra.mxu0 %v1106_v53  ;;  %626 = vmatprep.subr.bf16.mxu1 %v1152_v8 }
  0x89   :  { %653 = vmatprep.subr.bf16.mxu0 %v1114_v54  ;;  %v267_v54 = vrot.slane %v254_v34, %v266_v52  ;;  %v835_v34 = vand.u32 127, %v256_v31 }
  0x8b   :  { %627 = vmatpush1.bf16.msra.mxu1 %v1157_v11  ;;  %v1318_v11 = vmov 0   ;;  %vm866_vm7 = vcmp.lt.s32.totalorder %v835_v34, 8  ;;  %vm865_vm8 = vcmp.lt.s32.totalorder %v835_v34, 6  ;;  %vm864_vm9 = vcmp.lt.s32.totalorder %v835_v34, 4 }
  0x8c   :  { %654 = vmatpush1.bf16.msra.mxu0 %v1112_v57  ;;  %1018 = vmatprep.subr.bf16.mxu1 %v1316_v0  ;;  %vm863_vm10 = vcmp.lt.s32.totalorder %v835_v34, 2  ;;  %vm861_vm13 = vcmp.lt.s32.totalorder %v835_v34, 10 }
  0x8d   :  { %655 = vmatprep.subr.bf16.mxu0 %v1120_v58  ;;  %1052 = vset.pattern.permute.xlu0 %v1318_v11 }
  0x90   :  { %656 = vmatpush1.bf16.msra.mxu0 %v1118_v59 }
  0x91   :  { %657 = vmatprep.subr.bf16.mxu0 %v1126_v60 }
  0x94   :  { %658 = vmatpush1.bf16.msra.mxu0 %v1124_v61 }
  0x95   :  { %659 = vmatprep.subr.bf16.mxu0 %v1132_v62 }
  0x98   :  { %660 = vmatpush1.bf16.msra.mxu0 %v1130_v63  ;;  %v75_v63 = vld [vmem:[#allocation6 + $0x8] sm:$0xff] }
  0x99   :  { %661 = vmatprep.subr.bf16.mxu0 %v1138_v1 }
  0x9c   :  { %662 = vmatpush1.bf16.msra.mxu0 %v1136_v2 }
  0x9d   :  { %663 = vmatprep.subr.bf16.mxu0 %v1144_v3 }
  0xa0   :  { %664 = vmatpush1.bf16.msra.mxu0 %v1142_v4 }
  0xa1   :  { %665 = vmatprep.subr.bf16.mxu0 %v1150_v5 }
  0xa4   :  { %666 = vmatpush1.bf16.msra.mxu0 %v1148_v6 }
  0xa5   :  { %667 = vmatprep.subr.bf16.mxu0 %v1156_v9 }
  0xa8   :  { %668 = vmatpush1.bf16.msra.mxu0 %v1154_v10 }
 0x13e   :  { %v181_v15 = vpop.f32.mrb[0].mxu0 }
 0x13f   :  { %v182_v16 = vadd.f32 %v181_v15, %v98_v14  ;;  %v1016_v17 = vpop.f32.mrb[1].mxu0 }
 0x140   :  { %v184_v18 = vpop.f32.mrb[2].mxu0 }
 0x141   :  { %v187_v19 = vmax.f32 %v182_v16, 0.0  ;;  %v1017_v21 = vpop.f32.mrb[3].mxu0 }
 0x143   :  { %v188_v22 = vpack.c.bf16 %v187_v19, %v187_v19 }
 0x145   :  { %629 = vmatmul.mubr.bf16.vlgmr.msra.gmra.mrb[0].mxu1 %v188_v22  ;;  %670 = vmatmul.mubr.bf16.vlgmr.msra.gmra.mrb[4].mxu0 %v188_v22 }
 0x146   :  { %1034 = vmatprep.mubr.msk.bf16.mxu1 %vm1317_vm0, %v1316_v0  ;;  %1019 = vmatpush3.bf16.msra.mxu1 %v1158_v23 }
 0x147   :  { %1020 = vmatprep.subr.bf16.mxu1 %v1316_v0 }
 0x14a   :  { %1021 = vmatpush3.bf16.msra.mxu1 %v1159_v24 }
 0x14b   :  { %1022 = vmatprep.subr.bf16.mxu1 %v1316_v0 }
 0x14e   :  { %1023 = vmatpush3.bf16.msra.mxu1 %v1160_v25 }
 0x14f   :  { %1024 = vmatprep.subr.bf16.mxu1 %v1316_v0 }
 0x152   :  { %1025 = vmatpush3.bf16.msra.mxu1 %v1161_v26 }
 0x153   :  { %1026 = vmatprep.subr.bf16.mxu1 %v1316_v0 }
 0x156   :  { %1027 = vmatpush3.bf16.msra.mxu1 %v1162_v27 }
 0x157   :  { %1028 = vmatprep.subr.bf16.mxu1 %v1316_v0 }
 0x15a   :  { %1029 = vmatpush3.bf16.msra.mxu1 %v1163_v28  ;;  %v855_v28 = vsel %vm836_vm4, 1, %v1318_v11 }
 0x15b   :  { %1030 = vmatprep.subr.bf16.mxu1 %v1316_v0 }
 0x15e   :  { %1031 = vmatpush3.bf16.msra.mxu1 %v1164_v29  ;;  %v1319_v29 = vmov 10  }
 0x15f   :  { %1032 = vmatprep.subr.bf16.mxu1 %v1316_v0 }
 0x162   :  { %1033 = vmatpush3.bf16.msra.mxu1 %v1165_v30 }
 0x218   :  { %v630_v38 = vpop.f32.mrb[0].mxu1  ;;  %v671_v39 = vpop.f32.mrb[4].mxu0 }
 0x219   :  { %v631_v41 = vadd.f32 %v630_v38, %v259_v36  ;;  %v632_v42 = vpop.f32.mrb[1].mxu1  ;;  %v673_v43 = vpop.f32.mrb[5].mxu0  ;;  %v672_v56 = vadd.f32 %v671_v39, %v267_v54 }
 0x21a   :  { %v633_v44 = vadd.f32 %v632_v42, %v263_v37  ;;  %v634_v45 = vpop.f32.mrb[2].mxu1  ;;  %v675_v46 = vpop.f32.mrb[6].mxu0  ;;  %v674_v53 = vadd.f32 %v673_v43, %v271_v51 }
 0x21b   :  { %v966_v47 = vmul.f32 -1.442695, %v631_v41  ;;  %v635_v48 = vpop.f32.mrb[3].mxu1  ;;  %v676_v49 = vpop.f32.mrb[7].mxu0  ;;  %v841_v46 = vand.u32 1, %v835_v34 }
 0x21c   :  { %v967_v50 = vmul.f32 -1.442695, %v633_v44  ;;  %v968_v55 = vmul.f32 -1.442695, %v674_v53 }
 0x21d   :  { %1166 = vpow2.f32 %v966_v47  ;;  %vm849_vm11 = vcmp.eq.s32.totalorder %v841_v46, 0 }
 0x21e   :  { %1168 = vpow2.f32 %v967_v50 }
 0x21f   :  { %1170 = vpow2.f32 %v968_v55 }
 0x220   :  { %1172 = vtanh.f32 %v672_v56 }
 0x227   :  { %v1167_v57 = vpop.eup %1166 }
 0x228   :  { %v1169_v58 = vpop.eup %1168  ;;  %v681_v59 = vadd.f32 1.0, %v1167_v57 }
 0x229   :  { %v687_v60 = vadd.f32 1.0, %v1169_v58  ;;  %v1171_v61 = vpop.eup %1170 }
 0x22a   :  { %1174 = vrcp.f32 %v681_v59  ;;  %v1173_v62 = vpop.eup %1172  ;;  %v694_v4 = vadd.f32 1.0, %v1171_v61 }
 0x22b   :  { %1176 = vrcp.f32 %v687_v60 }
 0x22c   :  { %1178 = vrcp.f32 %v694_v4 }
 0x234   :  { %v1175_v1 = vpop.eup %1174 }
 0x235   :  { %v1177_v2 = vpop.eup %1176  ;;  %v698_v3 = vmul.f32 %v1175_v1, %v1173_v62 }
 0x236   :  { %v697_v5 = vmul.f32 %v1177_v2, %v75_v63  ;;  %v1179_v7 = vpop.eup %1178 }
 0x238   :  { %v699_v6 = vadd.f32 %v698_v3, %v697_v5 }
 0x23a   :  { %1180 = vtanh.f32 %v699_v6  ;;  %875 = vst [vmem:[#allocation11 + $0x8] sm:$0xff] %v699_v6 }
 0x244   :  { %v1181_v8 = vpop.eup %1180 }
 0x245   :  { %v701_v9 = vmul.f32 %v1181_v8, %v1179_v7 }
 0x247   :  { %v702_v10 = vpack.c.bf16 %v701_v9, %v701_v9  ;;  %874 = vst [vmem:[#allocation11] sm:$0xff] %v701_v9 }
 0x249   :  { %1035 = vmatmul.mubr.bf16.vlgmr.msra.gmra.mrb[4].mxu1 %v702_v10 }
 0x31c   :  { %v802_v13 = vpop.f32.mrb[4].mxu1 }
 0x31d   :  { %v803_v14 = vadd.f32 %v802_v13, %v719_v12  ;;  %v1036_v15 = vpop.f32.mrb[5].mxu1 }
 0x31e   :  { %v805_v16 = vpop.f32.mrb[6].mxu1 }
 0x31f   :  { %v977_v17 = vmul.f32 -1.442695, %v803_v14  ;;  %v1037_v18 = vpop.f32.mrb[7].mxu1 }
 0x321   :  { %1182 = vpow2.f32 %v977_v17 }
 0x32b   :  { %v1183_v19 = vpop.eup %1182 }
 0x32c   :  { %v811_v21 = vadd.f32 1.0, %v1183_v19 }
 0x32e   :  { %1184 = vrcp.f32 %v811_v21 }
 0x338   :  { %v1185_v22 = vpop.eup %1184 }
 0x339   :  { %v814_v23 = vmax.f32 %v1185_v22, 1e-06 }
 0x33b   :  { %v815_v24 = vmin.f32 %v814_v23, 0.999999 }
 0x33d   :  { %vm821_vm1 = vcmp.lt.f32.partialorder %v1404_v20, %v815_v24  ;;  %vm825_vm2 = vcmp.gt.f32.partialorder %v815_v24, 0.5  ;;  %1186 = vlog2.f32 %v815_v24  ;;  %v818_v27 = vsub.f32 1.0, %v815_v24 }
 0x33e   :  { %v822_v25 = vsel %vm821_vm1, 1, %v1318_v11  ;;  %vm1425_vm3 = vmxor %vm821_vm1, %vm825_vm2  ;;  %v830_v35 = vsub.f32 0.0, %v815_v24  ;;  %v978_v31 = vsel %vm821_vm1, 1.0, %v1316_v0 }
 0x33f   :  { %851 = vperm.xlu0 %1052, %v822_v25   ;;  %1188 = vlog2.f32 %v818_v27  ;;  %vm827_vm6 = vmxor %vm1425_vm3, %vm1320_vm5 }
 0x340   :  { %v979_v41 = vsel %vm827_vm6, 1.0, %v1316_v0 }
 0x343   :  { %1053 = vset.pattern.permute.xlu0 %v1319_v29 }
 0x344   :  { %857 = vperm.xlu0 %1053, %v855_v28  }
 0x347   :  { %v1187_v30 = vpop.eup %1186 }
 0x348   :  { %v817_v32 = vmul.f32 0.6931472, %v1187_v30 }
 0x349   :  { %v1189_v33 = vpop.eup %1188 }
 0x34a   :  { %v820_v36 = vmul.f32 0.6931472, %v1189_v33  ;;  %v831_v38 = vmul.f32 %v830_v35, %v817_v32 }
 0x34c   :  { %v824_v37 = vsel %vm821_vm1, %v817_v32, %v820_v36  ;;  %v832_v39 = vmul.f32 %v820_v36, %v818_v27 }
 0x34e   :  { %v833_v40 = vsub.f32 %v831_v38, %v832_v39 }
 0x350   :  { %v867_v42 = vsel %vm866_vm7, %v979_v41, %v833_v40 }
 0x351   :  { %v868_v43 = vsel %vm865_vm8, %v815_v24, %v867_v42 }
 0x352   :  { %v869_v44 = vsel %vm864_vm9, %v978_v31, %v868_v43 }
 0x353   :  { %v870_v45 = vsel %vm863_vm10, %v824_v37, %v869_v44 }
 0x3be   :  { %v852_v47 = vpop.permute.xlu0 %851 }
 0x3bf   :  { %vm853_vm12 = vcmp.eq.s32.totalorder %v852_v47, 1 }
 0x3c0   :  { %vm854_vm14 = vmor %vm849_vm11, %vm853_vm12 }
 0x3c3   :  { %v858_v48 = vpop.permute.xlu0 %857 }
 0x3c4   :  { %vm859_vm15 = vcmp.eq.s32.totalorder %v858_v48, 1 }
 0x3c5   :  { %vm860_vm0 = vmand %vm859_vm15, %vm854_vm14 }
 0x3c6   :  { %vm862_vm2 = vmand %vm860_vm0, %vm861_vm13 }
 0x3c7   :  { %v871_v49 = vsel %vm862_vm2, %v870_v45, 0.0 }
 0x3c8   :  { %876 = vst [vmem:[#allocation11 + $0x10] sm:$0xff] %v871_v49 }
 0x3c9   :  { %1289 = shalt.err (!%p1286_p8)
}
 0x3ca   :  { %s1290_s15 = scalar_lea.hbm %s1455_s4, 384 }
 0x3cb   :  { %p1291_p9 = scmp.ne.s32.totalorder %s1455_s4, %s1290_s15  ;;  %p1294_p10 = scmp.lt.u32.totalorder %s1290_s15, %s1455_s4 }
 0x3cd   :  { %p1296_p11 = pnand %p1294_p10, %p1291_p9 }
 0x3cf   :  { %1299 = shalt.err (!%p1296_p11)
}
 0x3d0   :  { %886 = dma.vmem_to_hbm [thread:$0]  %s884_s11, 384, %s1455_s4, [#allocation5]  }
 0x3d1   :  { %1306 = dma.done.wait [#allocation5], 384  }
 0x3d2   :  { %1307 = vsyncadd [#allocation5], 4294966912 }
 0x3d3   :  { %890 = vsyncpa [#allocation4], 1 }
 0x3d4   :  { %891 = vsyncpa [#allocation7], 1 }
 0x3d5   :  { %892 = vsyncpa [#allocation10], 1 }
 0x3d6   :  { %893 = vsyncpa [#allocation5], 1 }

</bundles_post_ra>
